<compile_context>
chip_gen: v5e
topology: v5e:2x2
jax: 0.10.0
libtpu: 0.0.40
codegen_flags: <defaults>
</compile_context>

<pallas_src>
import jax
import jax.numpy as jnp
import numpy as np
from jax.experimental import pallas as pl
from jax.experimental.pallas import tpu as pltpu

EPS = 1e-06
_SLAB_W = 128  # lane-dense output width


def _redist_kernel(x_ref, w_ref, b_ref, mid_ref, u_ref, row_ref, sum_ref):
    """One batch tile.

    x_ref   (TILE_B, E)  bf16   thoughtvector tile
    w_ref   (E, 2)       bf16   [w_enable | w_favor]
    b_ref   (1, 2)       f32    [b_enable, b_favor]
    mid_ref (TILE_B, 1)  f32    1.0 at mid-move rows
    u_ref   (TILE_B, 2)  f32    uniform[0,1) samples
    row_ref (TILE_B, 128) f32   packed per-row outputs (cols 0..9)
    sum_ref (1, 128)      f32   per-tile column sums of row slab
    """
    logits = jnp.dot(x_ref[...], w_ref[...],
                     preferred_element_type=jnp.float32) + b_ref[...]      # (TB, 2)
    p = jnp.clip(jax.nn.sigmoid(logits), EPS, 1.0 - EPS)                   # (TB, 2)

    # Bernoulli(p): 1 with probability p (matches torch.bernoulli on clamped probs).
    dec = (u_ref[...] < p).astype(jnp.float32)                             # (TB, 2)
    argm = (dec == (p > 0.5).astype(jnp.float32)).astype(jnp.float32)      # (TB, 2)

    # Two transcendentals per head; logprob and entropy reuse them.
    log_p = jnp.log(p)
    log_1mp = jnp.log(1.0 - p)
    logprob = dec * log_p + (1.0 - dec) * log_1mp
    entropy = -p * log_p - (1.0 - p) * log_1mp

    # Masking: enable head zeroed at mid-move rows; favor head zeroed wherever the
    # (already mid-masked) enable decision is 0 — exactly the reference ordering.
    keep_mid = 1.0 - mid_ref[...]                                          # (TB, 1)
    en_dec_m = dec[:, 0:1] * keep_mid                                      # (TB, 1)
    mask = jnp.concatenate([keep_mid, en_dec_m], axis=1)                   # (TB, 2)

    dec_m = dec * mask
    argm_m = argm * mask
    logprob_m = logprob * mask
    entropy_m = entropy * mask
    probs_m = p * mask

    tb = dec_m.shape[0]
    # Packed lane-dense slab.  Column layout:
    #   0: enable_logprob   1: favor_logprob
    #   2: enable_probs_cl  3: favor_probs_cl
    #   4: enable_decision  5: favor_decision
    #   6: enable_entropy   7: favor_entropy
    #   8: enable_argmax    9: favor_argmax
    slab = jnp.concatenate(
        [logprob_m, probs_m, dec_m, entropy_m, argm_m,
         jnp.zeros((tb, _SLAB_W - 10), jnp.float32)],
        axis=1)                                                            # (TB, 128)

    row_ref[...] = slab
    # One XLU reduce: per-tile partial sums (entropy sums, argmax counts, decision sum
    # live in cols 6,7,8,9,4 — the other lanes are ignored by the wrapper).
    sum_ref[...] = jnp.sum(slab, axis=0, keepdims=True)


def _choose_tile_b(B, E):
    """Largest power-of-two batch tile dividing B, capped well below VMEM limits."""
    tile = B
    for t in (1024, 512, 256, 128, 64, 32, 16, 8):
        if B % t == 0:
            tile = t
            break
    # Keep double-buffered bf16 x tile + f32 output slab comfortably under 8 MiB
    # (fits the 32 MiB default scoped limit and v7x's 64 MiB physical VMEM).
    while tile > 8 and tile % 2 == 0 and (2 * tile * E * 2 + 2 * tile * _SLAB_W * 4) > (8 << 20):
        tile //= 2
    return tile


def _forward_impl(key, x, w2, b2, mid_mask):
    B, E = x.shape
    tile_b = _choose_tile_b(B, E)
    num_tiles = B // tile_b

    uniforms = jax.random.uniform(key, (B, 2), jnp.float32)
    x_bf = x.astype(jnp.bfloat16)      # bf16 matmul operands, f32 accumulate
    w_bf = w2.astype(jnp.bfloat16)

    row, partial = pl.pallas_call(
        _redist_kernel,
        grid=(num_tiles,),
        out_shape=(
            jax.ShapeDtypeStruct((B, _SLAB_W), jnp.float32),
            jax.ShapeDtypeStruct((num_tiles, _SLAB_W), jnp.float32),
        ),
        in_specs=[
            pl.BlockSpec((tile_b, E), lambda i: (i, 0)),   # x
            pl.BlockSpec((E, 2), lambda i: (0, 0)),        # packed weights
            pl.BlockSpec((1, 2), lambda i: (0, 0)),        # packed bias
            pl.BlockSpec((tile_b, 1), lambda i: (i, 0)),   # mid-move mask
            pl.BlockSpec((tile_b, 2), lambda i: (i, 0)),   # uniforms
        ],
        out_specs=(
            pl.BlockSpec((tile_b, _SLAB_W), lambda i: (i, 0)),
            pl.BlockSpec((1, _SLAB_W), lambda i: (i, 0)),
        ),
        compiler_params=pltpu.CompilerParams(
            dimension_semantics=("parallel",)),
    )(x_bf, w_bf, b2, mid_mask, uniforms)

    sums = jnp.sum(partial, axis=0)                         # (128,) tiny final reduce

    en_logprob = row[:, 0:1]
    fa_logprob = row[:, 1:2]
    en_probs_clone = row[:, 2:3]
    fa_probs_clone = row[:, 3:4]
    en_decision = row[:, 4:5].astype(jnp.uint8)
    fa_decision = row[:, 5:6].astype(jnp.uint8)

    en_entropy = sums[6]
    fa_entropy = sums[7]
    en_argmax_count = sums[8].astype(jnp.int32)
    fa_argmax_count = sums[9].astype(jnp.int32)
    en_dec_sum = sums[4].astype(jnp.int32)

    return (en_logprob, en_probs_clone, en_decision, en_entropy,
            fa_logprob, fa_probs_clone, fa_decision, fa_entropy,
            en_argmax_count, fa_argmax_count, en_dec_sum)


_forward_jit = jax.jit(_forward_impl)


def redistribution_policy_forward(thoughtvector, testing, mid_move_indices,
                                  w_enable, b_enable, w_favor, b_favor, key):
    """Mirrors RedistributionPolicy.forward.

    `testing` is unused (as in the reference).  Count outputs are returned as device
    scalars (no blocking .item()-style host syncs inside the wrapper).
    """
    del testing
    B, E = thoughtvector.shape

    # Parameter packing (2-column weight / bias).  In a real model this is done once
    # and cached, not per call.
    w2 = jnp.stack([jnp.ravel(jnp.asarray(w_enable, jnp.float32)),
                    jnp.ravel(jnp.asarray(w_favor, jnp.float32))], axis=1)   # (E, 2)
    b2 = jnp.concatenate([jnp.ravel(jnp.asarray(b_enable, jnp.float32)),
                          jnp.ravel(jnp.asarray(b_favor, jnp.float32))]).reshape(1, 2)

    mid_np = np.zeros((B, 1), np.float32)
    if len(mid_move_indices) > 0:
        mid_np[np.asarray(mid_move_indices, np.int64), 0] = 1.0
    mid_mask = jnp.asarray(mid_np)

    (en_logprob, en_probs_clone, en_dec, en_ent,
     fa_logprob, fa_probs_clone, fa_dec, fa_ent,
     en_argmax_count, fa_argmax_count, en_dec_sum) = _forward_jit(
         key, jnp.asarray(thoughtvector, jnp.float32), w2, b2, mid_mask)

    n_live = B - len(mid_move_indices)   # Python int, same as the reference
    return (en_logprob, en_probs_clone, en_dec, en_ent,
            fa_logprob, fa_probs_clone, fa_dec, fa_ent,
            en_argmax_count, fa_argmax_count, n_live, en_dec_sum)


if __name__ == "__main__":
    # Small deterministic setup consistent with the module defaults.
    B = 8
    E = 100  # embedding_size default of the PyTorch module
    key = jax.random.PRNGKey(0)
    k1, k2, k3, k4, k5, ksample = jax.random.split(key, 6)

    thoughtvector = jax.random.normal(k1, (B, E), jnp.float32)
    w_enable = jax.random.normal(k2, (E,), jnp.float32) * 0.1
    b_enable = jax.random.normal(k3, (), jnp.float32) * 0.1
    w_favor = jax.random.normal(k4, (E,), jnp.float32) * 0.1
    b_favor = jax.random.normal(k5, (), jnp.float32) * 0.1

    mid_move_indices = [1, 4]

    outputs = redistribution_policy_forward(
        thoughtvector, False, mid_move_indices,
        w_enable, b_enable, w_favor, b_favor, key=ksample)

    for o in outputs:
        if isinstance(o, jax.Array):
            jax.block_until_ready(o)

    (en_logprob, en_probs_clone, en_dec, en_ent,
     fa_logprob, fa_probs_clone, fa_dec, fa_ent,
     en_am, fa_am, n_live, en_sum) = outputs

    # Light sanity checks (shapes / masking invariants of the reference).
    assert en_logprob.shape == (B, 1) and fa_logprob.shape == (B, 1)
    assert en_dec.dtype == jnp.uint8 and fa_dec.dtype == jnp.uint8
    assert float(en_probs_clone[1, 0]) == 0.0 and float(en_probs_clone[4, 0]) == 0.0
    assert int(en_dec[1, 0]) == 0 and int(en_dec[4, 0]) == 0
    assert float(en_logprob[1, 0]) == 0.0 and float(en_logprob[4, 0]) == 0.0
    # favor head is zero wherever (masked) enable decision is zero
    assert bool(jnp.all(fa_dec.astype(jnp.int32) <= en_dec.astype(jnp.int32)))
    assert bool(jnp.all((fa_probs_clone == 0.0) | (en_dec.astype(jnp.int32) == 1)))
    assert n_live == B - len(mid_move_indices)
    assert int(en_sum) == int(jnp.sum(en_dec.astype(jnp.int32)))
    assert float(en_ent) >= 0.0 and float(fa_ent) >= 0.0

    print("KERNEL_OK")
</pallas_src>

<mosaic_0001>
module attributes {stable_mosaic.version = 11 : i64} {
  func.func @_redist_kernel(%arg0: i32, %arg1: memref<8x100xbf16, #tpu.memory_space<vmem>>, %arg2: memref<100x2xbf16, #tpu.memory_space<vmem>>, %arg3: memref<1x2xf32, #tpu.memory_space<vmem>>, %arg4: memref<8x1xf32, #tpu.memory_space<vmem>>, %arg5: memref<8x2xf32, #tpu.memory_space<vmem>>, %arg6: memref<8x128xf32, #tpu.memory_space<vmem>>, %arg7: memref<1x128xf32, #tpu.memory_space<vmem>>) attributes {dimension_semantics = [#tpu.dimension_semantics<parallel>], iteration_bounds = array<i64: 1>, scalar_prefetch = 0 : i64, scratch_operands = 0 : i64, tpu.core_type = #tpu.core_type<tc>, window_params = [{transform_indices = @transform_0, window_bounds = array<i64: 8, 100>}, {pipeline_mode = #tpu.pipeline_mode<synchronous>, transform_indices = @transform_1, window_bounds = array<i64: 100, 2>}, {pipeline_mode = #tpu.pipeline_mode<synchronous>, transform_indices = @transform_2, window_bounds = array<i64: 1, 2>}, {transform_indices = @transform_3, window_bounds = array<i64: 8, 1>}, {transform_indices = @transform_4, window_bounds = array<i64: 8, 2>}, {transform_indices = @transform_5, window_bounds = array<i64: 8, 128>}, {transform_indices = @transform_6, window_bounds = array<i64: 1, 128>}]} {
    %c0 = arith.constant 0 : index
    %c0_0 = arith.constant 0 : index
    %0 = vector.load %arg1[%c0, %c0_0] : memref<8x100xbf16, #tpu.memory_space<vmem>>, vector<8x100xbf16>
    %c0_1 = arith.constant 0 : index
    %c0_2 = arith.constant 0 : index
    %1 = vector.load %arg2[%c0_1, %c0_2] : memref<100x2xbf16, #tpu.memory_space<vmem>>, vector<100x2xbf16>
    %cst = arith.constant dense<0.000000e+00> : vector<8x2xf32>
    %2 = tpu.matmul %0, %1, %cst {dimension_numbers = #tpu.dot_dimension_numbers<[1], [0], [0], [1], [0, 0, 1, 1], [], []>} : vector<8x100xbf16>, vector<100x2xbf16>, vector<8x2xf32> -> vector<8x2xf32>
    %c0_3 = arith.constant 0 : index
    %c0_4 = arith.constant 0 : index
    %3 = vector.load %arg3[%c0_3, %c0_4] : memref<1x2xf32, #tpu.memory_space<vmem>>, vector<1x2xf32>
    %4 = vector.broadcast %3 : vector<1x2xf32> to vector<8x2xf32>
    %5 = arith.addf %2, %4 : vector<8x2xf32>
    %6 = arith.negf %5 : vector<8x2xf32>
    %7 = math.exp %6 : vector<8x2xf32>
    %cst_5 = arith.constant 1.000000e+00 : f32
    %8 = vector.broadcast %cst_5 : f32 to vector<8x2xf32>
    %9 = arith.addf %8, %7 : vector<8x2xf32>
    %10 = arith.divf %8, %9 : vector<8x2xf32>
    %cst_6 = arith.constant 9.99999997E-7 : f32
    %cst_7 = arith.constant 0.999998986 : f32
    %11 = vector.broadcast %cst_6 : f32 to vector<8x2xf32>
    %12 = arith.maximumf %11, %10 : vector<8x2xf32>
    %13 = vector.broadcast %cst_7 : f32 to vector<8x2xf32>
    %14 = arith.minimumf %13, %12 : vector<8x2xf32>
    %c0_8 = arith.constant 0 : index
    %c0_9 = arith.constant 0 : index
    %15 = vector.load %arg5[%c0_8, %c0_9] : memref<8x2xf32, #tpu.memory_space<vmem>>, vector<8x2xf32>
    %16 = arith.cmpf olt, %15, %14 : vector<8x2xf32>
    %17 = arith.extui %16 : vector<8x2xi1> to vector<8x2xi32>
    %18 = arith.sitofp %17 : vector<8x2xi32> to vector<8x2xf32>
    %cst_10 = arith.constant 5.000000e-01 : f32
    %19 = vector.broadcast %cst_10 : f32 to vector<8x2xf32>
    %20 = arith.cmpf ogt, %14, %19 : vector<8x2xf32>
    %21 = arith.extui %20 : vector<8x2xi1> to vector<8x2xi32>
    %22 = arith.sitofp %21 : vector<8x2xi32> to vector<8x2xf32>
    %23 = arith.cmpf oeq, %18, %22 : vector<8x2xf32>
    %24 = arith.extui %23 : vector<8x2xi1> to vector<8x2xi32>
    %25 = arith.sitofp %24 : vector<8x2xi32> to vector<8x2xf32>
    %26 = math.log %14 : vector<8x2xf32>
    %cst_11 = arith.constant 1.000000e+00 : f32
    %27 = vector.broadcast %cst_11 : f32 to vector<8x2xf32>
    %28 = arith.subf %27, %14 : vector<8x2xf32>
    %29 = math.log %28 : vector<8x2xf32>
    %30 = arith.mulf %18, %26 : vector<8x2xf32>
    %cst_12 = arith.constant 1.000000e+00 : f32
    %31 = vector.broadcast %cst_12 : f32 to vector<8x2xf32>
    %32 = arith.subf %31, %18 : vector<8x2xf32>
    %33 = arith.mulf %32, %29 : vector<8x2xf32>
    %34 = arith.addf %30, %33 : vector<8x2xf32>
    %cst_13 = arith.constant 0.000000e+00 : f32
    %35 = vector.broadcast %cst_13 : f32 to vector<8x2xf32>
    %36 = arith.subf %35, %14 : vector<8x2xf32>
    %37 = arith.mulf %36, %26 : vector<8x2xf32>
    %cst_14 = arith.constant 1.000000e+00 : f32
    %38 = vector.broadcast %cst_14 : f32 to vector<8x2xf32>
    %39 = arith.subf %38, %14 : vector<8x2xf32>
    %40 = arith.mulf %39, %29 : vector<8x2xf32>
    %41 = arith.subf %37, %40 : vector<8x2xf32>
    %c0_15 = arith.constant 0 : index
    %c0_16 = arith.constant 0 : index
    %42 = vector.load %arg4[%c0_15, %c0_16] : memref<8x1xf32, #tpu.memory_space<vmem>>, vector<8x1xf32>
    %cst_17 = arith.constant 1.000000e+00 : f32
    %43 = vector.broadcast %cst_17 : f32 to vector<8x1xf32>
    %44 = arith.subf %43, %42 : vector<8x1xf32>
    %45 = vector.extract_strided_slice %18 {offsets = [0, 0], sizes = [8, 1], strides = [1, 1]} : vector<8x2xf32> to vector<8x1xf32>
    %46 = arith.mulf %45, %44 : vector<8x1xf32>
    %47 = tpu.concatenate %44, %46 in 1 : vector<8x1xf32>, vector<8x1xf32> -> vector<8x2xf32>
    %48 = arith.mulf %18, %47 : vector<8x2xf32>
    %49 = arith.mulf %25, %47 : vector<8x2xf32>
    %50 = arith.mulf %34, %47 : vector<8x2xf32>
    %51 = arith.mulf %41, %47 : vector<8x2xf32>
    %52 = arith.mulf %14, %47 : vector<8x2xf32>
    %cst_18 = arith.constant 0.000000e+00 : f32
    %53 = vector.broadcast %cst_18 : f32 to vector<8x118xf32>
    %54 = tpu.concatenate %50, %52, %48, %51, %49, %53 in 1 : vector<8x2xf32>, vector<8x2xf32>, vector<8x2xf32>, vector<8x2xf32>, vector<8x2xf32>, vector<8x118xf32> -> vector<8x128xf32>
    %c0_19 = arith.constant 0 : index
    %c0_20 = arith.constant 0 : index
    %55 = vector.load %arg6[%c0_19, %c0_20] : memref<8x128xf32, #tpu.memory_space<vmem>>, vector<8x128xf32>
    tpu.vector_store %arg6[%c0_19, %c0_20], %54 {strides = array<i32>} : memref<8x128xf32, #tpu.memory_space<vmem>>, vector<8x128xf32>,
    %cst_21 = arith.constant dense<0.000000e+00> : vector<128xf32>
    %56 = vector.multi_reduction <add>, %54, %cst_21 [0] : vector<8x128xf32> to vector<128xf32>
    %57 = vector.shape_cast %56 : vector<128xf32> to vector<1x128xf32>
    %c0_22 = arith.constant 0 : index
    %c0_23 = arith.constant 0 : index
    %58 = vector.load %arg7[%c0_22, %c0_23] : memref<1x128xf32, #tpu.memory_space<vmem>>, vector<1x128xf32>
    tpu.vector_store %arg7[%c0_22, %c0_23], %57 {strides = array<i32>} : memref<1x128xf32, #tpu.memory_space<vmem>>, vector<1x128xf32>,
    return
  }
  func.func @transform_0(%arg0: i32) -> (i32, i32) {
    %c0_i32 = arith.constant 0 : i32
    %c0_i32_0 = arith.constant 0 : i32
    return %arg0, %c0_i32 : i32, i32
  }
  func.func @transform_1(%arg0: i32) -> (i32, i32) {
    %c0_i32 = arith.constant 0 : i32
    %c0_i32_0 = arith.constant 0 : i32
    %c0_i32_1 = arith.constant 0 : i32
    return %c0_i32, %c0_i32_0 : i32, i32
  }
  func.func @transform_2(%arg0: i32) -> (i32, i32) {
    %c0_i32 = arith.constant 0 : i32
    %c0_i32_0 = arith.constant 0 : i32
    %c0_i32_1 = arith.constant 0 : i32
    return %c0_i32, %c0_i32_0 : i32, i32
  }
  func.func @transform_3(%arg0: i32) -> (i32, i32) {
    %c0_i32 = arith.constant 0 : i32
    %c0_i32_0 = arith.constant 0 : i32
    return %arg0, %c0_i32 : i32, i32
  }
  func.func @transform_4(%arg0: i32) -> (i32, i32) {
    %c0_i32 = arith.constant 0 : i32
    %c0_i32_0 = arith.constant 0 : i32
    return %arg0, %c0_i32 : i32, i32
  }
  func.func @transform_5(%arg0: i32) -> (i32, i32) {
    %c0_i32 = arith.constant 0 : i32
    %c0_i32_0 = arith.constant 0 : i32
    return %arg0, %c0_i32 : i32, i32
  }
  func.func @transform_6(%arg0: i32) -> (i32, i32) {
    %c0_i32 = arith.constant 0 : i32
    %c0_i32_0 = arith.constant 0 : i32
    return %arg0, %c0_i32 : i32, i32
  }
}

</mosaic_0001>

<bundles_post_ra>
// kernel: _forward_impl.1
= control target key start
LH: loop header
LB: loop body
LE: loop exit
PB: predicated region body
PF: predicated region fallthrough
CT: control target
= control target key end

     0   :  { %vm84_vm0 = vcmask 1041408   ;;  %vm80_vm1 = vcmask 818176   ;;  %v251_v34 = vmov 0.0   ;;  %s252_s16 = smov 1   ;;  %vm152_vm8 = vcmask 7168   ;;  %s255_s17 = smov 8   ;;  %s331_s1 = inlined_call_operand.vmem [shape: bf16[100,2], index: 1, kind: input, shape index: {}]   ;;  %s332_s2 = inlined_call_operand.vmem [shape: f32[1,2], index: 2, kind: input, shape index: {}]   ;;  %s333_s0 = inlined_call_operand.vmem [shape: bf16[8,100], index: 0, kind: input, shape index: {}]   ;;  %s334_s3 = inlined_call_operand.vmem [shape: f32[8,1], index: 3, kind: input, shape index: {}]   ;;  %s335_s4 = inlined_call_operand.vmem [shape: f32[8,2], index: 4, kind: input, shape index: {}]   ;;  %s336_s5 = inlined_call_operand.vmem [shape: f32[8,128], index: 5, kind: output, shape index: {0}]   ;;  %s337_s6 = inlined_call_operand.vmem [shape: f32[1,128], index: 6, kind: output, shape index: {1}]  }
   0x1   :  { %v36_v0 = vld [vmem:[%s331_s1 + $0x30] sm:$0x3]  ;;  %v235_v4 = vld [vmem:[%s331_s1 + $0x28] sm:$0xff]  ;;  %v234_v5 = vld [vmem:[%s331_s1 + $0x20] sm:$0xff]  ;;  %s256_s18 = smov 6   ;;  %vm175_vm10 = vcmask 15360  }
   0x2   :  { %v66_v1 = vunpack.c.l.b16 %v36_v0  ;;  %v233_v6 = vld [vmem:[%s331_s1 + $0x18] sm:$0xff]  ;;  %v232_v7 = vld [vmem:[%s331_s1 + $0x10] sm:$0xff]  ;;  %v231_v8 = vld [vmem:[%s331_s1 + $0x8] sm:$0xff]  ;;  %vm177_vm11 = vcmask 31744   ;;  %vm179_vm12 = vcmask 48128   ;;  %vm181_vm13 = vcmask 64512  }
   0x3   :  { %v230_v9 = vld [vmem:[%s331_s1] sm:$0xff]  ;;  %vm183_vm14 = vcmask 80896  }
   0x4   :  { %v73_v2 = vpack.c.b16 %v66_v1, %v66_v1  ;;  %v23_v10 = vld [vmem:[%s333_s0] sm:$0xf] }
   0x5   :  { %v242_v11 = vld [vmem:[%s332_s2] ss:$0 sm:$0xff] }
   0x6   :  { %v86_v3 = vsel %vm84_vm0, %v73_v2, 0  ;;  %v145_v28 = vld [vmem:[%s334_s3] sm:$0xff]  ;;  %s253_s3 = smov 2  }
   0x7   :  { %89 = vmatpush.bf16.msra.mxu0 %v86_v3  ;;  %v122_v30 = vld [vmem:[%s335_s4] sm:$0xff]  ;;  %v146_v32 = vsub.f32 1.0, %v145_v28  ;;  %s254_s4 = smov 4  }
   0xb   :  { %90 = vmatpush.bf16.msra.mxu0 %v235_v4 }
   0xf   :  { %91 = vmatpush.bf16.msra.mxu0 %v234_v5 }
  0x13   :  { %92 = vmatpush.bf16.msra.mxu0 %v233_v6 }
  0x17   :  { %93 = vmatpush.bf16.msra.mxu0 %v232_v7 }
  0x1b   :  { %94 = vmatpush.bf16.msra.mxu0 %v231_v8 }
  0x1f   :  { %95 = vmatpush.bf16.msra.mxu0 %v230_v9 }
  0x22   :  { %225 = vmatmul.msk.bf16.vlgmr.msra.gmra.mxu0 %vm80_vm1, %v23_v10 }
  0x9f   :  { %v97_v12 = vpop.f32.mrf.mxu0 }
  0xa0   :  { %v98_v13 = vadd.f32 %v242_v11, %v97_v12 }
  0xa2   :  { %v226_v14 = vmul.f32 -1.442695, %v98_v13 }
  0xa4   :  { %243 = vpow2.f32 %v226_v14 }
  0xa7   :  { %v99_v15 = vpop.f32.mrf.mxu0 }
  0xaa   :  { %v244_v16 = vpop.eup %243 }
  0xab   :  { %v104_v17 = vadd.f32 1.0, %v244_v16 }
  0xad   :  { %245 = vrcp.f32 %v104_v17  ;;  %v116_v21 = vand.u32 2147483648, %v104_v17  ;;  %v114_v23 = vand.u32 2147483647, %v104_v17  ;;  %vm110_vm3 = vweird.f32 %v104_v17 }
  0xaf   :  { %v117_v25 = vor.u32 1.1754944e-38, %v116_v21  ;;  %vm115_vm5 = vcmp.eq.f32.partialorder %v114_v23, 8.507059e+37 }
  0xb3   :  { %v246_v18 = vpop.eup %245 }
  0xb4   :  { %v106_v19 = vmul.f32 %v246_v18, %v104_v17  ;;  %vm111_vm2 = vweird.f32 %v246_v18 }
  0xb5   :  { %vm112_vm4 = vmor %vm110_vm3, %vm111_vm2 }
  0xb6   :  { %v107_v20 = vsub.f32 1.0, %v106_v19 }
  0xb8   :  { %v108_v22 = vmul.f32 %v246_v18, %v107_v20 }
  0xba   :  { %v109_v24 = vadd.f32 %v246_v18, %v108_v22 }
  0xbc   :  { %v113_v26 = vsel %vm112_vm4, %v246_v18, %v109_v24 }
  0xbd   :  { %v118_v27 = vsel %vm115_vm5, %v117_v25, %v113_v26 }
  0xbe   :  { %v120_v29 = vmax.f32 %v118_v27, 1e-06 }
  0xc0   :  { %v121_v31 = vmin.f32 %v120_v29, 0.999999 }
  0xc2   :  { %vm123_vm6 = vcmp.lt.f32.partialorder %v122_v30, %v121_v31  ;;  %247 = vlog2.f32 %v121_v31  ;;  %v134_v33 = vsub.f32 1.0, %v121_v31  ;;  %vm126_vm7 = vcmp.gt.f32.partialorder %v121_v31, 0.5 }
  0xc3   :  { %v227_v35 = vsel %vm123_vm6, 1.0, %v251_v34  ;;  %v228_v45 = vsel %vm126_vm7, 1.0, %v251_v34  ;;  %v141_v53 = vsub.f32 0.0, %v121_v31 }
  0xc4   :  { %v147_v36 = vmul.f32 %v227_v35, %v146_v32  ;;  %249 = vlog2.f32 %v134_v33  ;;  %v138_v41 = vsub.f32 1.0, %v227_v35  ;;  %vm129_vm9 = vcmp.eq.f32.partialorder %v227_v35, %v228_v45 }
  0xc5   :  { %v229_v48 = vsel %vm129_vm9, 1.0, %v251_v34 }
  0xc6   :  { %149 = vrot.lane.b32.xlu0 %v147_v36, %s252_s16 }
  0xc8   :  { %v248_v37 = vpop.eup %247 }
  0xc9   :  { %v133_v38 = vmul.f32 0.6931472, %v248_v37 }
  0xca   :  { %v250_v39 = vpop.eup %249 }
  0xcb   :  { %v136_v40 = vmul.f32 0.6931472, %v250_v39  ;;  %v137_v42 = vmul.f32 %v227_v35, %v133_v38  ;;  %v142_v55 = vmul.f32 %v141_v53, %v133_v38 }
  0xcd   :  { %v139_v43 = vmul.f32 %v138_v41, %v136_v40  ;;  %v143_v54 = vmul.f32 %v136_v40, %v134_v33 }
  0xcf   :  { %v140_v44 = vadd.f32 %v139_v43, %v137_v42  ;;  %v144_v56 = vsub.f32 %v142_v55, %v143_v54 }
 0x138   :  { %v150_v46 = vpop.permute.xlu0 %149 }
 0x139   :  { %v153_v47 = vsel %vm152_vm8, %v146_v32, %v150_v46 }
 0x13a   :  { %v158_v49 = vmul.f32 %v153_v47, %v121_v31  ;;  %v154_v50 = vmul.f32 %v227_v35, %v153_v47  ;;  %v155_v51 = vmul.f32 %v229_v48, %v153_v47  ;;  %v156_v52 = vmul.f32 %v153_v47, %v140_v44 }
 0x13b   :  { %v157_v57 = vmul.f32 %v153_v47, %v144_v56 }
 0x13c   :  { %160 = vrot.lane.b32.xlu0 %v158_v49, %s253_s3  ;;  %164 = vrot.lane.b32.xlu1 %v154_v50, %s254_s4 }
 0x13d   :  { %172 = vrot.lane.b32.xlu2 %v155_v51, %s255_s17 }
 0x144   :  { %168 = vrot.lane.b32.xlu1 %v157_v57, %s256_s18 }
 0x197   :  { %v173_v63 = vpop.permute.xlu2 %172 }
 0x1ae   :  { %v165_v58 = vpop.permute.xlu1 %164  ;;  %v161_v59 = vpop.permute.xlu0 %160 }
 0x1af   :  { %v176_v60 = vsel %vm175_vm10, %v156_v52, %v161_v59 }
 0x1b0   :  { %v178_v61 = vsel %vm177_vm11, %v176_v60, %v165_v58 }
 0x1b6   :  { %v169_v62 = vpop.permute.xlu1 %168 }
 0x1b7   :  { %v180_v0 = vsel %vm179_vm12, %v178_v61, %v169_v62 }
 0x1b8   :  { %v182_v1 = vsel %vm181_vm13, %v180_v0, %v173_v63 }
 0x1b9   :  { %v184_v2 = vsel %vm183_vm14, %v182_v1, 0.0 }
 0x1ba   :  { %185 = vst [vmem:[%s336_s5] sm:$0xff] %v184_v2  ;;  %v186_v3 = vrot.slane %v184_v2, 4 }
 0x1bc   :  { %v187_v4 = vadd.f32 %v186_v3, %v184_v2 }
 0x1be   :  { %v188_v5 = vrot.slane %v187_v4, 2 }
 0x1c0   :  { %v189_v6 = vadd.f32 %v188_v5, %v187_v4 }
 0x1c2   :  { %v190_v7 = vrot.slane %v189_v6, 1 }
 0x1c4   :  { %v191_v8 = vadd.f32 %v190_v7, %v189_v6 }
 0x1c6   :  { %192 = vst [vmem:[%s337_s6] sm:$0x1] %v191_v8 }

</bundles_post_ra>
